<compile_context>
chip_gen: v5e
topology: v5e:2x2
jax: 0.10.0
libtpu: 0.0.40
codegen_flags: <defaults>
</compile_context>

<pallas_src>
import math
import functools

import jax
import jax.numpy as jnp
from jax.experimental import pallas as pl
from jax.experimental.pallas import tpu as pltpu


def _gcn_kernel(adj_ref, x_ref, h0_ref, w_ref, *rest,
                theta, alpha, variant, residual, f_in):
    if residual:
        xres_ref, out_ref, acc_ref = rest
    else:
        out_ref, acc_ref = rest
        xres_ref = None

    k = pl.program_id(1)

    @pl.when(k == 0)
    def _():
        acc_ref[...] = jnp.zeros_like(acc_ref)

    # Partial contraction: adj[i-tile, k-tile] @ x[k-tile, :] -> f32 accumulator.
    acc_ref[...] += jnp.dot(adj_ref[...], x_ref[...],
                            preferred_element_type=jnp.float32)

    @pl.when(k == pl.num_programs(1) - 1)
    def _():
        hi = acc_ref[...]                              # (tn, f_in) f32
        h0 = h0_ref[...].astype(jnp.float32)           # (tn, f_in) f32
        r = (1.0 - alpha) * hi + alpha * h0            # f32 VPU mix
        w = w_ref[...]
        if variant:
            # concat([hi, h0], 1) @ W  ==  hi @ W[:f_in] + h0 @ W[f_in:]
            # (avoids the lane-axis concatenation / relayout copy)
            sw = (jnp.dot(hi, w[:f_in, :], preferred_element_type=jnp.float32)
                  + jnp.dot(h0, w[f_in:, :], preferred_element_type=jnp.float32))
        else:
            sw = jnp.dot(r, w, preferred_element_type=jnp.float32)
        out = theta * sw + (1.0 - theta) * r
        if residual:
            out = out + xres_ref[...].astype(jnp.float32)
        out_ref[...] = out.astype(out_ref.dtype)


def graph_convolution(x, adj, h0, weight, *, lamda, alpha, l,
                      variant=False, residual=False,
                      tn=256, tk=512, matmul_dtype=jnp.bfloat16):
    """Pallas forward pass of GraphConvolution (GCNII layer).

    x, h0 : (N, F_in) float32
    adj   : (N, N)    float32 (dense adjacency; cast to `matmul_dtype` for adj@x)
    weight: (2*F_in if variant else F_in, F_out) float32
    """
    N, f_in = x.shape
    f_in_eff, f_out = weight.shape
    assert f_in_eff == (2 * f_in if variant else f_in), "weight shape mismatch"
    theta = math.log(lamda / l + 1.0)

    tn = min(tn, N)
    tk = min(tk, N)
    assert N % tn == 0, "row tile must divide N"
    assert N % tk == 0, "contraction tile must divide N"

    mm_bytes = jnp.dtype(matmul_dtype).itemsize
    adj_mm = adj.astype(matmul_dtype)
    x_mm = x.astype(matmul_dtype)

    kernel = functools.partial(
        _gcn_kernel,
        theta=float(theta), alpha=float(alpha),
        variant=bool(variant), residual=bool(residual), f_in=f_in,
    )

    in_specs = [
        pl.BlockSpec((tn, tk), lambda i, k: (i, k)),            # adj tile (bf16)
        pl.BlockSpec((tk, f_in), lambda i, k: (k, 0)),          # x K-tile (bf16)
        pl.BlockSpec((tn, f_in), lambda i, k: (i, 0)),          # h0 row-tile (f32)
        pl.BlockSpec((f_in_eff, f_out), lambda i, k: (0, 0)),   # weight (f32)
    ]
    inputs = [adj_mm, x_mm, h0, weight]
    if residual:
        in_specs.append(pl.BlockSpec((tn, f_in), lambda i, k: (i, 0)))  # x row-tile
        inputs.append(x)

    # VMEM footprint: double-buffered I/O tiles + f32 accumulator scratch.
    vmem = (2 * tn * tk * mm_bytes          # adj
            + 2 * tk * f_in * mm_bytes      # x
            + 2 * tn * f_in * 4             # h0
            + 2 * f_in_eff * f_out * 4      # weight
            + 2 * tn * f_out * 4            # out
            + tn * f_in * 4)                # accumulator
    if residual:
        vmem += 2 * tn * f_in * 4
    vmem_limit = int(min(max(2 * vmem, 32 << 20), 100 << 20))

    flops = 2 * N * N * f_in + 2 * N * f_in_eff * f_out
    bytes_accessed = (N * N * mm_bytes + N * f_in * mm_bytes
                      + N * f_in * 4 + f_in_eff * f_out * 4 + N * f_out * 4
                      + (N * f_in * 4 if residual else 0))

    grid_spec = pltpu.PrefetchScalarGridSpec(
        num_scalar_prefetch=0,
        grid=(N // tn, N // tk),
        in_specs=in_specs,
        out_specs=pl.BlockSpec((tn, f_out), lambda i, k: (i, 0)),
        scratch_shapes=[pltpu.VMEM((tn, f_in), jnp.float32)],
    )

    return pl.pallas_call(
        kernel,
        out_shape=jax.ShapeDtypeStruct((N, f_out), jnp.float32),
        grid_spec=grid_spec,
        compiler_params=pltpu.CompilerParams(
            dimension_semantics=("parallel", "arbitrary"),
            vmem_limit_bytes=vmem_limit),
        cost_estimate=pl.CostEstimate(flops=int(flops), transcendentals=0,
                                      bytes_accessed=int(bytes_accessed)),
    )(*inputs)


def graph_convolution_ref(x, adj, h0, weight, *, lamda, alpha, l,
                          variant=False, residual=False,
                          matmul_dtype=jnp.float32):
    """Pure-JAX reference mirroring the PyTorch forward (optionally with the
    same bf16 adj@x operands / f32 accumulation as the kernel)."""
    theta = math.log(lamda / l + 1.0)
    hi = jnp.dot(adj.astype(matmul_dtype), x.astype(matmul_dtype),
                 preferred_element_type=jnp.float32)
    h0 = h0.astype(jnp.float32)
    if variant:
        support = jnp.concatenate([hi, h0], axis=1)
        r = (1.0 - alpha) * hi + alpha * h0
    else:
        support = (1.0 - alpha) * hi + alpha * h0
        r = support
    out = theta * (support @ weight) + (1.0 - theta) * r
    if residual:
        out = out + x
    return out


if __name__ == "__main__":
    # Small deterministic problem: N=256 nodes, hidden=128 (lane-dense output).
    N, f_in, f_out = 256, 128, 128
    lamda, alpha, l = 0.5, 0.1, 1

    key = jax.random.PRNGKey(0)
    kx, kadj, kh0, kw, kw2 = jax.random.split(key, 5)

    x = jax.random.normal(kx, (N, f_in), dtype=jnp.float32)
    h0 = jax.random.normal(kh0, (N, f_in), dtype=jnp.float32)

    # Row-normalized dense "adjacency" (stands in for the sparse adj of spmm).
    adj_raw = jax.random.uniform(kadj, (N, N), dtype=jnp.float32)
    adj = adj_raw / jnp.sum(adj_raw, axis=1, keepdims=True)

    # Parameter init matching reset_parameters(): U(-stdv, stdv), stdv=1/sqrt(out_features)
    stdv = 1.0 / math.sqrt(f_out)
    w_plain = jax.random.uniform(kw, (f_in, f_out), dtype=jnp.float32,
                                 minval=-stdv, maxval=stdv)
    w_variant = jax.random.uniform(kw2, (2 * f_in, f_out), dtype=jnp.float32,
                                   minval=-stdv, maxval=stdv)

    configs = [
        # exercises the 2x2 grid / K-accumulation path
        dict(variant=False, residual=False, weight=w_plain, tn=128, tk=128),
        # exercises the variant (split-matmul) path
        dict(variant=True, residual=False, weight=w_variant, tn=256, tk=256),
        # exercises the residual path and tile clamping (tk=512 -> 256)
        dict(variant=False, residual=True, weight=w_plain, tn=256, tk=512),
    ]

    for cfg in configs:
        w = cfg.pop("weight")
        out = graph_convolution(x, adj, h0, w,
                                lamda=lamda, alpha=alpha, l=l,
                                matmul_dtype=jnp.bfloat16, **cfg)
        out = jax.block_until_ready(out)
        assert out.shape == (N, f_out)

        # Precision-matched reference (bf16 adj@x operands, f32 accumulation).
        ref_bf16 = graph_convolution_ref(
            x, adj, h0, w, lamda=lamda, alpha=alpha, l=l,
            variant=cfg["variant"], residual=cfg["residual"],
            matmul_dtype=jnp.bfloat16)
        assert jnp.allclose(out, ref_bf16, atol=2e-3, rtol=2e-3), \
            f"mismatch vs bf16-matched ref for {cfg}"

        # Full-f32 PyTorch reference; loose tolerance for the bf16 matmul operands.
        ref_f32 = graph_convolution_ref(
            x, adj, h0, w, lamda=lamda, alpha=alpha, l=l,
            variant=cfg["variant"], residual=cfg["residual"],
            matmul_dtype=jnp.float32)
        assert jnp.allclose(out, ref_f32, atol=1e-2, rtol=1e-2), \
            f"mismatch vs f32 ref for {cfg}"

    print("KERNEL_OK")
</pallas_src>

<mosaic_0001>
module attributes {stable_mosaic.version = 11 : i64} {
  func.func @_gcn_kernel(%arg0: i32, %arg1: i32, %arg2: memref<128x128xbf16, #tpu.memory_space<vmem>>, %arg3: memref<128x128xbf16, #tpu.memory_space<vmem>>, %arg4: memref<128x128xf32, #tpu.memory_space<vmem>>, %arg5: memref<128x128xf32, #tpu.memory_space<vmem>>, %arg6: memref<128x128xf32, #tpu.memory_space<vmem>>, %arg7: memref<128x128xf32, #tpu.memory_space<vmem>>) attributes {dimension_semantics = [#tpu.dimension_semantics<parallel>, #tpu.dimension_semantics<arbitrary>], iteration_bounds = array<i64: 2, 2>, scalar_prefetch = 0 : i64, scratch_operands = 1 : i64, tpu.core_type = #tpu.core_type<tc>, window_params = [{transform_indices = @transform_0, window_bounds = array<i64: 128, 128>}, {transform_indices = @transform_1, window_bounds = array<i64: 128, 128>}, {transform_indices = @transform_2, window_bounds = array<i64: 128, 128>}, {pipeline_mode = #tpu.pipeline_mode<synchronous>, transform_indices = @transform_3, window_bounds = array<i64: 128, 128>}, {transform_indices = @transform_4, window_bounds = array<i64: 128, 128>}]} {
    %c0_i32 = arith.constant 0 : i32
    %0 = arith.cmpi eq, %arg1, %c0_i32 : i32
    %1 = arith.extui %0 : i1 to i32
    %c0_i32_0 = arith.constant 0 : i32
    %2 = arith.cmpi ne, %1, %c0_i32_0 : i32
    scf.if %2 {
      %cst_9 = arith.constant 0.000000e+00 : f32
      %12 = vector.broadcast %cst_9 : f32 to vector<128x128xf32>
      %c0_10 = arith.constant 0 : index
      %c0_11 = arith.constant 0 : index
      %13 = vector.load %arg7[%c0_10, %c0_11] : memref<128x128xf32, #tpu.memory_space<vmem>>, vector<128x128xf32>
      tpu.vector_store %arg7[%c0_10, %c0_11], %12 {strides = array<i32>} : memref<128x128xf32, #tpu.memory_space<vmem>>, vector<128x128xf32>,
    } else {
    }
    %c0 = arith.constant 0 : index
    %c0_1 = arith.constant 0 : index
    %3 = vector.load %arg7[%c0, %c0_1] : memref<128x128xf32, #tpu.memory_space<vmem>>, vector<128x128xf32>
    %c0_2 = arith.constant 0 : index
    %c0_3 = arith.constant 0 : index
    %4 = vector.load %arg2[%c0_2, %c0_3] : memref<128x128xbf16, #tpu.memory_space<vmem>>, vector<128x128xbf16>
    %c0_4 = arith.constant 0 : index
    %c0_5 = arith.constant 0 : index
    %5 = vector.load %arg3[%c0_4, %c0_5] : memref<128x128xbf16, #tpu.memory_space<vmem>>, vector<128x128xbf16>
    %cst = arith.constant dense<0.000000e+00> : vector<128x128xf32>
    %6 = tpu.matmul %4, %5, %cst {dimension_numbers = #tpu.dot_dimension_numbers<[1], [0], [0], [1], [0, 0, 1, 1], [], []>} : vector<128x128xbf16>, vector<128x128xbf16>, vector<128x128xf32> -> vector<128x128xf32>
    %7 = arith.addf %3, %6 : vector<128x128xf32>
    %c0_6 = arith.constant 0 : index
    %c0_7 = arith.constant 0 : index
    %8 = vector.load %arg7[%c0_6, %c0_7] : memref<128x128xf32, #tpu.memory_space<vmem>>, vector<128x128xf32>
    tpu.vector_store %arg7[%c0_6, %c0_7], %7 {strides = array<i32>} : memref<128x128xf32, #tpu.memory_space<vmem>>, vector<128x128xf32>,
    %c1_i32 = arith.constant 1 : i32
    %9 = arith.cmpi eq, %arg1, %c1_i32 : i32
    %10 = arith.extui %9 : i1 to i32
    %c0_i32_8 = arith.constant 0 : i32
    %11 = arith.cmpi ne, %10, %c0_i32_8 : i32
    scf.if %11 {
      %c0_9 = arith.constant 0 : index
      %c0_10 = arith.constant 0 : index
      %12 = vector.load %arg7[%c0_9, %c0_10] : memref<128x128xf32, #tpu.memory_space<vmem>>, vector<128x128xf32>
      %c0_11 = arith.constant 0 : index
      %c0_12 = arith.constant 0 : index
      %13 = vector.load %arg4[%c0_11, %c0_12] : memref<128x128xf32, #tpu.memory_space<vmem>>, vector<128x128xf32>
      %cst_13 = arith.constant 0.899999976 : f32
      %14 = vector.broadcast %cst_13 : f32 to vector<128x128xf32>
      %15 = arith.mulf %14, %12 : vector<128x128xf32>
      %cst_14 = arith.constant 1.000000e-01 : f32
      %16 = vector.broadcast %cst_14 : f32 to vector<128x128xf32>
      %17 = arith.mulf %16, %13 : vector<128x128xf32>
      %18 = arith.addf %15, %17 : vector<128x128xf32>
      %c0_15 = arith.constant 0 : index
      %c0_16 = arith.constant 0 : index
      %19 = vector.load %arg5[%c0_15, %c0_16] : memref<128x128xf32, #tpu.memory_space<vmem>>, vector<128x128xf32>
      %cst_17 = arith.constant dense<0.000000e+00> : vector<128x128xf32>
      %20 = tpu.matmul %18, %19, %cst_17 {dimension_numbers = #tpu.dot_dimension_numbers<[1], [0], [0], [1], [0, 0, 1, 1], [], []>} : vector<128x128xf32>, vector<128x128xf32>, vector<128x128xf32> -> vector<128x128xf32>
      %cst_18 = arith.constant 0.405465096 : f32
      %21 = vector.broadcast %cst_18 : f32 to vector<128x128xf32>
      %22 = arith.mulf %21, %20 : vector<128x128xf32>
      %cst_19 = arith.constant 0.594534874 : f32
      %23 = vector.broadcast %cst_19 : f32 to vector<128x128xf32>
      %24 = arith.mulf %23, %18 : vector<128x128xf32>
      %25 = arith.addf %22, %24 : vector<128x128xf32>
      %c0_20 = arith.constant 0 : index
      %c0_21 = arith.constant 0 : index
      %26 = vector.load %arg6[%c0_20, %c0_21] : memref<128x128xf32, #tpu.memory_space<vmem>>, vector<128x128xf32>
      tpu.vector_store %arg6[%c0_20, %c0_21], %25 {strides = array<i32>} : memref<128x128xf32, #tpu.memory_space<vmem>>, vector<128x128xf32>,
    } else {
    }
    return
  }
  func.func @transform_0(%arg0: i32, %arg1: i32) -> (i32, i32) {
    %c0_i32 = arith.constant 0 : i32
    return %arg0, %arg1 : i32, i32
  }
  func.func @transform_1(%arg0: i32, %arg1: i32) -> (i32, i32) {
    %c0_i32 = arith.constant 0 : i32
    %c0_i32_0 = arith.constant 0 : i32
    return %arg1, %c0_i32 : i32, i32
  }
  func.func @transform_2(%arg0: i32, %arg1: i32) -> (i32, i32) {
    %c0_i32 = arith.constant 0 : i32
    %c0_i32_0 = arith.constant 0 : i32
    return %arg0, %c0_i32 : i32, i32
  }
  func.func @transform_3(%arg0: i32, %arg1: i32) -> (i32, i32) {
    %c0_i32 = arith.constant 0 : i32
    %c0_i32_0 = arith.constant 0 : i32
    %c0_i32_1 = arith.constant 0 : i32
    return %c0_i32, %c0_i32_0 : i32, i32
  }
  func.func @transform_4(%arg0: i32, %arg1: i32) -> (i32, i32) {
    %c0_i32 = arith.constant 0 : i32
    %c0_i32_0 = arith.constant 0 : i32
    return %arg0, %c0_i32 : i32, i32
  }
}

</mosaic_0001>

<bundles_post_ra>
// kernel: tpu_custom_call.1
= control target key start
LH: loop header
LB: loop body
LE: loop exit
PB: predicated region body
PF: predicated region fallthrough
CT: control target
= control target key end

     0   :  { %s2047_s0 = inlined_call_operand.hbm [shape: bf16[256,256], index: 0, kind: input, shape index: {}]   ;;  %s2048_s1 = inlined_call_operand.hbm [shape: bf16[256,128], index: 1, kind: input, shape index: {}]   ;;  %s2049_s2 = inlined_call_operand.hbm [shape: f32[256,128], index: 2, kind: input, shape index: {}]   ;;  %s2050_s3 = inlined_call_operand.hbm [shape: f32[128,128], index: 3, kind: input, shape index: {}]   ;;  %s2051_s4 = inlined_call_operand.hbm [shape: f32[256,128], index: 4, kind: output, shape index: {}]  }
   0x1   :  { %2063 = sst [smem:[#allocation25_spill]] %s2048_s1 }
   0x2   :  { %2064 = sst [smem:[#allocation26_spill]] %s2050_s3 }
   0x3   :  { %2065 = sst [smem:[#allocation27_spill]] %s2051_s4 }
   0x4   :  { %9 = vsyncpa [#allocation4], 0 }
   0x5   :  { %11 = vsyncpa [#allocation4 + $0x1], 0 }
   0x6   :  { %12 = vsyncpa [#allocation7], 0 }
   0x7   :  { %14 = vsyncpa [#allocation7 + $0x1], 0 }
   0x8   :  { %15 = vsyncpa [#allocation10], 0 }
   0x9   :  { %16 = vsyncpa [#allocation5], 0 }
   0xa   :  { %18 = vsyncpa [#allocation5 + $0x1], 0  ;;  %s1616_s15 = smov 0   ;;  %s1618_s16 = smov 0  }
   0xb   :  { %s1620_s17 = smov 0   ;;  %s1622_s18 = smov 0  }
   0xc   :  { %s1624_s19 = smov 0   ;;  %s1626_s20 = smov 0  }
   0xd   :  { %s1628_s21 = smov 0   ;;  %s1630_s22 = smov 0  }
   0xe   :  { %s1632_s23 = smov 0   ;;  %s1634_s24 = smov 0  }
   0xf   :  { %s1636_s25 = smov 0   ;;  %s1638_s26 = smov 0  }
  0x10   :  { %s1640_s27 = smov 0   ;;  %s1642_s28 = smov 0  }
  0x11 LB: > { %2066 = sst [smem:[#allocation17_spill]] %s1549_s20  ;;  %s33_s29 = sadd.s32 1, %s1573_s26  ;;  %s1581_s28 = sphi %s1642_s28, %s24_s28   ;;  %s1577_s27 = sphi %s1640_s27, %s2108_s27   ;;  %s1573_s26 = sphi %s1638_s26, %s2098_s26   ;;  %s1569_s25 = sphi %s1636_s25, %s2107_s25   ;;  %s1565_s24 = sphi %s1634_s24, %s2097_s24   ;;  %s1561_s23 = sphi %s1632_s23, %s2096_s23   ;;  %s1557_s22 = sphi %s1630_s22, %s2106_s22   ;;  %s1553_s21 = sphi %s1628_s21, %s2105_s21   ;;  %s1549_s20 = sphi %s1626_s20, %s2094_s20   ;;  %s1545_s19 = sphi %s1624_s19, %s2104_s19   ;;  %s1541_s18 = sphi %s1622_s18, %s2103_s18   ;;  %s1537_s17 = sphi %s1620_s17, %s2102_s17   ;;  %s1533_s16 = sphi %s1618_s16, %s2101_s16   ;;  %s1529_s15 = sphi %s1616_s15, %s2100_s15  }
  0x12   : > { %2067 = sst [smem:[#allocation18_spill]] %s1561_s23  ;;  %s36_s30 = sadd.s32 1, %s1577_s27 }
  0x13   : > { %2068 = sst [smem:[#allocation19_spill]] %s1569_s25  ;;  %p34_p0 = scmp.ge.s32.totalorder %s33_s29, 2 }
  0x14   : > { %2069 = sst [smem:[#allocation20_spill]] %s1573_s26  ;;  %p53_p1 = scmp.eq.s32.totalorder %s1581_s28, 0 }
  0x15   : > { %s71_s5 = sadd.s32 1, %s1549_s20  ;;  %p78_p2 = scmp.ne.s32.totalorder %s1549_s20, %s1545_s19 }
  0x16   : > { %s2110_s29 = smov (%p34_p0, %s33_s29), 0  ;;  %s2112_s30 = smov (!%p34_p0, %s36_s30), %s1577_s27 }
  0x17   : > { %2070 = sst [smem:[#allocation21_spill]] %s2110_s29  ;;  %s41_s6 = ssub.s32 %s1573_s26, %s2110_s29 }
  0x18   : > { %p1699_p3 = por %p78_p2, %p53_p1  ;;  %p38_p4 = scmp.ge.s32.totalorder %s2112_s30, 2 }
  0x19   : > { %p69_p5 = scmp.eq.s32.totalorder %s41_s6, 0  ;;  %p84_p6 = scmp.ne.s32.totalorder %s1545_s19, %s1541_s18 }
  0x1a   : > { %s2114_s30 = smov (%p38_p4, %s2112_s30), 0  ;;  %p1180_p7 = scmp.lt.s32.totalorder %s1581_s28, 4 }
  0x1b   : > { %2072 = sst [smem:[#allocation22_spill]] %s2114_s30  ;;  %s1712_s9 = ssub.s32 %s1577_s27, %s2114_s30 }
  0x1c   : > { %s1708_s8 = scalar_select %p69_p5, %s1549_s20, %s71_s5  }
  0x1d   : > { %s42_s10 = sor.u32 %s41_s6, %s1712_s9  ;;  %p95_p8 = scmp.eq.s32.totalorder %s1712_s9, 0 }
  0x1e   : > { %2073 = sst [smem:[#allocation23_spill]] %s1708_s8  ;;  %p1717_p9 = scmp.eq.s32.totalorder %s42_s10, 0 }
  0x1f   : > { %s219_s12 = sand.u32 1, %s1581_s28   ;;  %s221_s13 = sand.u32 1, %s1549_s20  }
  0x20   : > { %s974_s14 = sshll.u32 %s221_s13, 6  ;;  %s1058_s5 = sshll.u32 %s1573_s26, 6 }
  0x21   : > { %s2075_s1 = sld [smem:[#allocation25_spill]]  ;;  %s223_s6 = scalar_lea.vmem [#allocation6], %s974_s14 }
  0x22   : > { %s231_s25 = sshll.u32 %s223_s6, 4  ;;  %p1169_p10 = pnand %p1180_p7, %p1699_p3  ;;  %s232_s25 = int_to_ptr.vmem [resolvable:$true] %s231_s25 }
  0x23   : > { %s1731_s10 = scalar_lea.sflag [#allocation7], %s219_s12  ;;  %s2056_s13 = smov 64  }
  0x24   : > { %s2060_s20 = smov 4   ;;  %s1738_s29 = sadd.s32 4294967295, %s1581_s28  }
  0x25   : > { %p967_p11 = scmp.ge.s32.totalorder %s1581_s28, 1  ;;  %p59_p12 = scmp.eq.s32.totalorder %s1738_s29, 0 }
  0x26   : > { %p155_p13 = scmp.eq.s32.totalorder %s1738_s29, 3  ;;  %p168_p0 = scmp.lt.s32.totalorder %s1581_s28, 5 }
  0x27   : > { %s228_s30 = scalar_lea.hbm %s2075_s1, %s1058_s5  ;;  %p1749_p2 = por %p84_p6, %p59_p12 }
  0x28   : > { %s229_s4 = sshll.u32 %s228_s30, 4  ;;  %s2077_s3 = sld [smem:[#allocation26_spill]]  ;;  %s230_s4 = int_to_ptr.hbm [resolvable:$true] %s229_s4 }
  0x29   : > { %1171 = dma.hbm_to_vmem [thread:$0]  (!%p1169_p10), %s230_s4, 1024, %s232_s25, %s1731_s10, %s2056_s13, %s2056_s13, %s2060_s20  }
  0x2a   : > { %p1756_p3 = pnand %p967_p11, %p168_p0  ;;  %s1585_s18 = smov [#allocation9]  }
  0x2b   : > { %s181_s12 = sshll.u32 %s1585_s18, 4  ;;  %s2058_s14 = smov 128   ;;  %s182_s12 = int_to_ptr.vmem [resolvable:$true] %s181_s12 }
  0x2c   : > { %p1161_p4 = pneg %p1756_p3  ;;  %s2057_s5 = smov 8  }
  0x2d   : > { %s45_s6 = sadd.s32 1, %s1561_s23  ;;  %p52_p6 = scmp.ne.s32.totalorder %s1561_s23, %s1557_s22 }
  0x2e   : > { %s179_s7 = sshll.u32 %s2077_s3, 4  ;;  %p1162_p5 = pnand %p1161_p4, %p59_p12  ;;  %s180_s7 = int_to_ptr.hbm [resolvable:$true] %s179_s7 }
  0x2f   : > { %s1773_s25 = scalar_select %p1717_p9, %s1561_s23, %s45_s6  }
  0x30   : > { %1164 = dma.hbm_to_vmem [thread:$0]  (!%p1162_p5), %s180_s7, 2048, %s182_s12, [#allocation10], %s2058_s14, %s2058_s14, %s2057_s5  }
  0x31   : > { %2079 = sst [smem:[#allocation24_spill]] %s1773_s25  ;;  %p1777_p10 = por %p53_p1, %p52_p6 }
  0x32   : > { %p58_p11 = scmp.ne.s32.totalorder %s1557_s22, %s1553_s21  ;;  %s195_s18 = sand.u32 1, %s1561_s23  }
  0x33   : > { %s1057_s13 = sshll.u32 %s1577_s27, 5  ;;  %s970_s11 = sshll.u32 %s195_s18, 6 }
  0x34   : > { %p1787_p0 = por %p59_p12, %p58_p11  ;;  %s204_s12 = sadd.s32 %s1573_s26, %s1057_s13 }
  0x35   : > { %s973_s6 = sshll.u32 %s204_s12, 2  ;;  %s199_s20 = scalar_lea.vmem [#allocation3], %s970_s11 }
  0x36   : > { %s206_s14 = scalar_lea.hbm %s2047_s0, %s973_s6  ;;  %s209_s1 = sshll.u32 %s199_s20, 4  ;;  %s210_s1 = int_to_ptr.vmem [resolvable:$true] %s209_s1 }
  0x37   : > { %s207_s3 = sshll.u32 %s206_s14, 4  ;;  %p1166_p9 = pnand %p1180_p7, %p1777_p10  ;;  %s208_s3 = int_to_ptr.hbm [resolvable:$true] %s207_s3 }
  0x38   : > { %s196_s13 = scalar_lea.sflag [#allocation4], %s195_s18  ;;  %s2082_s26 = smov 4  }
  0x39   : > { %s2083_s25 = smov 64   ;;  %s2084_s12 = smov 128  }
  0x3a   : > { %1168 = dma.hbm_to_vmem [thread:$0]  (!%p1166_p9), %s208_s3, 1024, %s210_s1, %s196_s13, %s2084_s12, %s2083_s25, %s2082_s26  }
  0x3b   : > { %s966_s23 = sadd.s32 4294967294, %s1581_s28   ;;  %s97_s5 = sadd.s32 1, %s1537_s17 }
  0x3c   : > { %p104_p4 = scmp.ne.s32.totalorder %s1537_s17, %s1533_s16  ;;  %p110_p6 = scmp.ne.s32.totalorder %s1533_s16, %s1529_s15 }
  0x3d   : > { %s1809_s11 = scalar_select %p95_p8, %s1537_s17, %s97_s5  }
  0x3e   : > { %p1813_p5 = por %p104_p4, %p53_p1  ;;  %p1821_p10 = por %p155_p13, %p104_p4 }
  0x3f   : > { %p161_p11 = scmp.eq.s32.totalorder %s966_s23, 3  ;;  %p1827_p9 = por %p110_p6, %p59_p12 }
  0x40   : > { %s243_s3 = sand.u32 1, %s1537_s17   ;;  %s1059_s25 = sshll.u32 %s1577_s27, 7 }
  0x41   : > { %p1832_p8 = por %p161_p11, %p110_p6  ;;  %s977_s9 = sshll.u32 %s243_s3, 7 }
  0x42   : > { %s250_s6 = scalar_lea.hbm %s2049_s2, %s1059_s25  ;;  %s245_s21 = scalar_lea.vmem [#allocation8], %s977_s9 }
  0x43   : > { %s253_s13 = sshll.u32 %s245_s21, 4  ;;  %s251_s5 = sshll.u32 %s250_s6, 4  ;;  %s254_s13 = int_to_ptr.vmem [resolvable:$true] %s253_s13  ;;  %s252_s5 = int_to_ptr.hbm [resolvable:$true] %s251_s5 }
  0x44   : > { %p1172_p1 = pnand %p1180_p7, %p1813_p5  ;;  %s2089_s23 = smov 8  }
  0x45   : > { %265 = sbr.rel (%p1756_p3) target bundleno = 518 (0x206), region = 36  ;;  %s267_s3 = sand.u32 (!%p1756_p3), 1, %s1557_s22  }
  0x46   : > { %1174 = dma.hbm_to_vmem [thread:$0]  (!%p1172_p1), %s252_s5, 2048, %s254_s13, %s1731_s10, %s2084_s12, %s2084_s12, %s2089_s23  }
  0x47   : > { %s981_s30 = sshll.u32 (!%p1756_p3), %s267_s3, 6  ;;  %s268_s25 = scalar_lea.sflag (!%p1756_p3), [#allocation4], %s267_s3 }
  0x48   : > { %s1851_s9 = scalar_lea.vmem (!%p1756_p3), [#allocation3], %s981_s30 }
  0x4a   : > { %1508 = dma.done.wait (%p1787_p0), %s268_s25, 1024  }
  0x4b   : > { %1510 = vsyncadd (%p1787_p0), %s268_s25, 4294966272  ;;  %s277_s20 = sand.u32 1, %s1738_s29   ;;  %s279_s10 = sand.u32 1, %s1545_s19  }
  0x4c   : > { %s982_s12 = sshll.u32 %s279_s10, 6  ;;  %s278_s8 = scalar_lea.sflag [#allocation7], %s277_s20 }
  0x4d   : > { %s1859_s18 = scalar_lea.vmem [#allocation6], %s982_s12 }
  0x4e   : > { %1512 = dma.done.wait (%p1749_p2), %s278_s8, 1024  }
  0x4f   : > { %1514 = vsyncadd (%p1749_p2), %s278_s8, 4294966272  ;;  %s289_s6 = sand.u32 1, %s1533_s16  }
  0x50   : > { %s983_s7 = sshll.u32 %s289_s6, 7 }
  0x51   : > { %s1868_s21 = scalar_lea.vmem [#allocation8], %s983_s7 }
  0x52   : > { %1516 = dma.done.wait (%p1827_p9), %s278_s8, 2048  }
  0x53   : > { %1518 = vsyncadd (%p1827_p9), %s278_s8, 4294965248 }
  0x54   : > { %1520 = dma.done.wait (%p59_p12), [#allocation10], 2048  }
  0x55   : > { %1522 = vsyncadd (%p59_p12), [#allocation10], 4294965248  ;;  %s1878_s4 = scalar_lea.vmem [#allocation11], %s983_s7  ;;  %p986_p7 = scmp.ne.s32.totalorder %s1565_s24, 0 }
  0x57   : > { %339 = sbr.rel (%p986_p7) target bundleno = 109 (0x6d), region = 56 }
  0x5c   : > { %v1588_v0 = vmov 0.0  }
  0x5d   : > { %340 = vst [vmem:[#allocation2 + $0x30] sm:$0xff] %v1588_v0 }
  0x5e   : > { %341 = vst [vmem:[#allocation2] sm:$0xff] %v1588_v0 }
  0x5f   : > { %342 = vst [vmem:[#allocation2 + $0x58] sm:$0xff] %v1588_v0 }
  0x60   : > { %343 = vst [vmem:[#allocation2 + $0x18] sm:$0xff] %v1588_v0 }
  0x61   : > { %344 = vst [vmem:[#allocation2 + $0x50] sm:$0xff] %v1588_v0 }
  0x62   : > { %345 = vst [vmem:[#allocation2 + $0x68] sm:$0xff] %v1588_v0 }
  0x63   : > { %346 = vst [vmem:[#allocation2 + $0x8] sm:$0xff] %v1588_v0 }
  0x64   : > { %347 = vst [vmem:[#allocation2 + $0x48] sm:$0xff] %v1588_v0 }
  0x65   : > { %348 = vst [vmem:[#allocation2 + $0x40] sm:$0xff] %v1588_v0 }
  0x66   : > { %349 = vst [vmem:[#allocation2 + $0x20] sm:$0xff] %v1588_v0 }
  0x67   : > { %350 = vst [vmem:[#allocation2 + $0x10] sm:$0xff] %v1588_v0 }
  0x68   : > { %351 = vst [vmem:[#allocation2 + $0x38] sm:$0xff] %v1588_v0 }
  0x69   : > { %352 = vst [vmem:[#allocation2 + $0x60] sm:$0xff] %v1588_v0 }
  0x6a   : > { %353 = vst [vmem:[#allocation2 + $0x70] sm:$0xff] %v1588_v0 }
  0x6b   : > { %354 = vst [vmem:[#allocation2 + $0x78] sm:$0xff] %v1588_v0 }
  0x6c   : > { %355 = vst [vmem:[#allocation2 + $0x28] sm:$0xff] %v1588_v0 }
  0x6d PF: > { %v1075_v1 = vld [vmem:[%s1859_s18 + $0x38] sm:$0xff]  ;;  %v1074_v2 = vld [vmem:[%s1859_s18 + $0x30] sm:$0xff]  ;;  %v1073_v3 = vld [vmem:[%s1859_s18 + $0x28] sm:$0xff]  ;;  %p1051_p12 = scmp.ne.s32.totalorder %s1565_s24, 1 }
  0x6e   : > { %500 = vmatpush.bf16.msra.mxu0 %v1075_v1  ;;  %1077 = vmatpush.bf16.msra.mxu1 %v1075_v1  ;;  %v1072_v4 = vld [vmem:[%s1859_s18 + $0x20] sm:$0xff]  ;;  %v1071_v5 = vld [vmem:[%s1859_s18 + $0x18] sm:$0xff]  ;;  %v1070_v6 = vld [vmem:[%s1859_s18 + $0x10] sm:$0xff] }
  0x6f   : > { %1078 = vmatpush.bf16.msra.mxu2 %v1075_v1  ;;  %1079 = vmatpush.bf16.msra.mxu3 %v1075_v1  ;;  %v1069_v7 = vld [vmem:[%s1859_s18 + $0x8] sm:$0xff]  ;;  %v1068_v8 = vld [vmem:[%s1859_s18] sm:$0xff]  ;;  %v1062_v10 = vld [vmem:[%s1851_s9 + $0x10] sm:$0xff] }
  0x70   : > { %v1060_v9 = vld [vmem:[%s1851_s9] sm:$0xff]  ;;  %v1066_v12 = vld [vmem:[%s1851_s9 + $0x30] sm:$0xff]  ;;  %v1061_v13 = vld [vmem:[%s1851_s9 + $0x8] sm:$0xff] }
  0x71   : > { %v1064_v11 = vld [vmem:[%s1851_s9 + $0x20] sm:$0xff]  ;;  %v1063_v14 = vld [vmem:[%s1851_s9 + $0x18] sm:$0xff]  ;;  %v1065_v15 = vld [vmem:[%s1851_s9 + $0x28] sm:$0xff] }
  0x72   : > { %501 = vmatpush.bf16.msra.mxu0 %v1074_v2  ;;  %1080 = vmatpush.bf16.msra.mxu1 %v1074_v2  ;;  %v1067_v16 = vld [vmem:[%s1851_s9 + $0x38] sm:$0xff]  ;;  %v356_v17 = vld [vmem:[#allocation2 + $0x30] sm:$0xff]  ;;  %v364_v23 = vld [vmem:[#allocation2 + $0x40] sm:$0xff] }
  0x73   : > { %1081 = vmatpush.bf16.msra.mxu2 %v1074_v2  ;;  %1082 = vmatpush.bf16.msra.mxu3 %v1074_v2  ;;  %v360_v18 = vld [vmem:[#allocation2 + $0x50] sm:$0xff]  ;;  %v368_v24 = vld [vmem:[#allocation2 + $0x60] sm:$0xff]  ;;  %v361_v26 = vld [vmem:[#allocation2 + $0x68] sm:$0xff] }
  0x74   : > { %v357_v25 = vld [vmem:[#allocation2] sm:$0xff]  ;;  %v369_v36 = vld [vmem:[#allocation2 + $0x70] sm:$0xff]  ;;  %v358_v37 = vld [vmem:[#allocation2 + $0x58] sm:$0xff] }
  0x75   : > { %v365_v35 = vld [vmem:[#allocation2 + $0x20] sm:$0xff]  ;;  %v362_v38 = vld [vmem:[#allocation2 + $0x8] sm:$0xff]  ;;  %v366_v47 = vld [vmem:[#allocation2 + $0x10] sm:$0xff] }
  0x76   : > { %502 = vmatpush.bf16.msra.mxu0 %v1073_v3  ;;  %1083 = vmatpush.bf16.msra.mxu1 %v1073_v3  ;;  %v370_v48 = vld [vmem:[#allocation2 + $0x78] sm:$0xff]  ;;  %v363_v50 = vld [vmem:[#allocation2 + $0x48] sm:$0xff] }
  0x77   : > { %1084 = vmatpush.bf16.msra.mxu2 %v1073_v3  ;;  %1085 = vmatpush.bf16.msra.mxu3 %v1073_v3  ;;  %v359_v49 = vld [vmem:[#allocation2 + $0x18] sm:$0xff]  ;;  %v371_v60 = vld [vmem:[#allocation2 + $0x28] sm:$0xff] }
  0x78   : > { %v367_v59 = vld [vmem:[#allocation2 + $0x38] sm:$0xff] }
  0x7a   : > { %503 = vmatpush.bf16.msra.mxu0 %v1072_v4  ;;  %1086 = vmatpush.bf16.msra.mxu1 %v1072_v4 }
  0x7b   : > { %1087 = vmatpush.bf16.msra.mxu2 %v1072_v4  ;;  %1088 = vmatpush.bf16.msra.mxu3 %v1072_v4 }
  0x7e   : > { %504 = vmatpush.bf16.msra.mxu0 %v1071_v5  ;;  %1089 = vmatpush.bf16.msra.mxu1 %v1071_v5 }
  0x7f   : > { %1090 = vmatpush.bf16.msra.mxu2 %v1071_v5  ;;  %1091 = vmatpush.bf16.msra.mxu3 %v1071_v5 }
  0x82   : > { %505 = vmatpush.bf16.msra.mxu0 %v1070_v6  ;;  %1092 = vmatpush.bf16.msra.mxu1 %v1070_v6 }
  0x83   : > { %1093 = vmatpush.bf16.msra.mxu2 %v1070_v6  ;;  %1094 = vmatpush.bf16.msra.mxu3 %v1070_v6 }
  0x86   : > { %506 = vmatpush.bf16.msra.mxu0 %v1069_v7  ;;  %1095 = vmatpush.bf16.msra.mxu1 %v1069_v7 }
  0x87   : > { %1096 = vmatpush.bf16.msra.mxu2 %v1069_v7  ;;  %1097 = vmatpush.bf16.msra.mxu3 %v1069_v7 }
  0x8a   : > { %507 = vmatpush.bf16.msra.mxu0 %v1068_v8  ;;  %1098 = vmatpush.bf16.msra.mxu1 %v1068_v8 }
  0x8b   : > { %1099 = vmatpush.bf16.msra.mxu2 %v1068_v8  ;;  %1100 = vmatpush.bf16.msra.mxu3 %v1068_v8 }
  0x8d   : > { %508 = vmatmul.bf16.vlgmr.msra.gmra.mxu0 %v1060_v9  ;;  %518 = vmatmul.bf16.vlgmr.msra.gmra.mxu1 %v1062_v10 }
  0x8e   : > { %528 = vmatmul.bf16.vlgmr.msra.gmra.mxu2 %v1064_v11  ;;  %538 = vmatmul.bf16.vlgmr.msra.gmra.mxu3 %v1066_v12 }
  0x9d   : > { %513 = vmatmul.bf16.gmra.mxu0 %v1061_v13  ;;  %523 = vmatmul.bf16.gmra.mxu1 %v1063_v14 }
  0x9e   : > { %533 = vmatmul.bf16.gmra.mxu2 %v1065_v15  ;;  %543 = vmatmul.bf16.gmra.mxu3 %v1067_v16 }
 0x10a   : > { %v509_v19 = vpop.f32.mrf.mxu0  ;;  %v519_v20 = vpop.f32.mrf.mxu1 }
 0x10b   : > { %v549_v21 = vadd.f32 %v509_v19, %v356_v17  ;;  %v553_v22 = vadd.f32 %v519_v20, %v360_v18 }
 0x10d   : > { %565 = vst [vmem:[#allocation2 + $0x30] sm:$0xff] %v549_v21 }
 0x10e   : > { %569 = vst [vmem:[#allocation2 + $0x50] sm:$0xff] %v553_v22 }
 0x111   : > { %v529_v27 = vpop.f32.mrf.mxu2  ;;  %v539_v28 = vpop.f32.mrf.mxu3 }
 0x112   : > { %v557_v29 = vadd.f32 %v529_v27, %v364_v23  ;;  %v561_v30 = vadd.f32 %v539_v28, %v368_v24  ;;  %v511_v31 = vpop.f32.mrf.mxu0  ;;  %v521_v32 = vpop.f32.mrf.mxu1 }
 0x113   : > { %v550_v33 = vadd.f32 %v511_v31, %v357_v25  ;;  %v554_v34 = vadd.f32 %v521_v32, %v361_v26 }
 0x114   : > { %573 = vst [vmem:[#allocation2 + $0x40] sm:$0xff] %v557_v29 }
 0x115   : > { %577 = vst [vmem:[#allocation2 + $0x60] sm:$0xff] %v561_v30 }
 0x116   : > { %566 = vst [vmem:[#allocation2] sm:$0xff] %v550_v33 }
 0x117   : > { %570 = vst [vmem:[#allocation2 + $0x68] sm:$0xff] %v554_v34 }
 0x119   : > { %v531_v39 = vpop.f32.mrf.mxu2  ;;  %v541_v40 = vpop.f32.mrf.mxu3 }
 0x11a   : > { %v558_v41 = vadd.f32 %v531_v39, %v365_v35  ;;  %v562_v42 = vadd.f32 %v541_v40, %v369_v36  ;;  %v514_v43 = vpop.f32.mrf.mxu0  ;;  %v524_v44 = vpop.f32.mrf.mxu1 }
 0x11b   : > { %v551_v45 = vadd.f32 %v514_v43, %v358_v37  ;;  %v555_v46 = vadd.f32 %v524_v44, %v362_v38 }
 0x11c   : > { %574 = vst [vmem:[#allocation2 + $0x20] sm:$0xff] %v558_v41 }
 0x11d   : > { %578 = vst [vmem:[#allocation2 + $0x70] sm:$0xff] %v562_v42 }
 0x11e   : > { %567 = vst [vmem:[#allocation2 + $0x58] sm:$0xff] %v551_v45 }
 0x11f   : > { %571 = vst [vmem:[#allocation2 + $0x8] sm:$0xff] %v555_v46 }
 0x121   : > { %v534_v51 = vpop.f32.mrf.mxu2  ;;  %v544_v52 = vpop.f32.mrf.mxu3 }
 0x122   : > { %v559_v53 = vadd.f32 %v534_v51, %v366_v47  ;;  %v563_v54 = vadd.f32 %v544_v52, %v370_v48  ;;  %v516_v55 = vpop.f32.mrf.mxu0  ;;  %v526_v56 = vpop.f32.mrf.mxu1 }
 0x123   : > { %v552_v57 = vadd.f32 %v516_v55, %v359_v49  ;;  %v556_v58 = vadd.f32 %v526_v56, %v363_v50 }
 0x124   : > { %575 = vst [vmem:[#allocation2 + $0x10] sm:$0xff] %v559_v53 }
 0x125   : > { %579 = vst [vmem:[#allocation2 + $0x78] sm:$0xff] %v563_v54 }
 0x126   : > { %568 = vst [vmem:[#allocation2 + $0x18] sm:$0xff] %v552_v57 }
 0x127   : > { %572 = vst [vmem:[#allocation2 + $0x48] sm:$0xff] %v556_v58 }
 0x129   : > { %v536_v61 = vpop.f32.mrf.mxu2  ;;  %v546_v62 = vpop.f32.mrf.mxu3  ;;  %584 = sbr.rel (%p1051_p12) target bundleno = 496 (0x1f0), region = 60 }
 0x12a   : > { %v560_v63 = vadd.f32 %v536_v61, %v367_v59  ;;  %v564_v0 = vadd.f32 %v546_v62, %v371_v60 }
 0x12c   : > { %576 = vst [vmem:[#allocation2 + $0x38] sm:$0xff] %v560_v63 }
 0x12d   : > { %580 = vst [vmem:[#allocation2 + $0x28] sm:$0xff] %v564_v0 }
 0x12e   : > { %v680_v1 = vld [vmem:[#allocation9 + $0x78] sm:$0xff]  ;;  %v679_v2 = vld [vmem:[#allocation9 + $0x70] sm:$0xff]  ;;  %v678_v3 = vld [vmem:[#allocation9 + $0x68] sm:$0xff] }
 0x12f   : > { %1102 = vmatpush.msra.mxu2 %v680_v1  ;;  %1103 = vmatpush.msra.mxu3 %v680_v1  ;;  %v677_v4 = vld [vmem:[#allocation9 + $0x60] sm:$0xff]  ;;  %v676_v5 = vld [vmem:[#allocation9 + $0x58] sm:$0xff]  ;;  %v675_v6 = vld [vmem:[#allocation9 + $0x50] sm:$0xff] }
 0x130   : > { %681 = vmatpush.msra.mxu0 %v680_v1  ;;  %1101 = vmatpush.msra.mxu1 %v680_v1  ;;  %v674_v7 = vld [vmem:[#allocation9 + $0x48] sm:$0xff]  ;;  %v673_v8 = vld [vmem:[#allocation9 + $0x40] sm:$0xff]  ;;  %v672_v9 = vld [vmem:[#allocation9 + $0x38] sm:$0xff] }
 0x131   : > { %1105 = vmatpush.msra.mxu2 %v679_v2  ;;  %1106 = vmatpush.msra.mxu3 %v679_v2  ;;  %v671_v10 = vld [vmem:[#allocation9 + $0x30] sm:$0xff]  ;;  %v670_v11 = vld [vmem:[#allocation9 + $0x28] sm:$0xff]  ;;  %v669_v12 = vld [vmem:[#allocation9 + $0x20] sm:$0xff] }
 0x132   : > { %682 = vmatpush.msra.mxu0 %v679_v2  ;;  %1104 = vmatpush.msra.mxu1 %v679_v2  ;;  %v593_v13 = vld [vmem:[#allocation2 + $0x40] sm:$0xff]  ;;  %v668_v17 = vld [vmem:[#allocation9 + $0x18] sm:$0xff]  ;;  %v667_v18 = vld [vmem:[#allocation9 + $0x10] sm:$0xff] }
 0x133   : > { %1108 = vmatpush.msra.mxu2 %v678_v3  ;;  %1109 = vmatpush.msra.mxu3 %v678_v3  ;;  %v609_v14 = vld [vmem:[%s1868_s21 + $0x40] sm:$0xff]  ;;  %v585_v19 = vld [vmem:[#allocation2 + $0x30] sm:$0xff]  ;;  %v625_v20 = vmul.f32 0.9, %v593_v13  ;;  %v666_v27 = vld [vmem:[#allocation9 + $0x8] sm:$0xff] }
 0x134   : > { %683 = vmatpush.msra.mxu0 %v678_v3  ;;  %1107 = vmatpush.msra.mxu1 %v678_v3  ;;  %v597_v15 = vld [vmem:[#allocation2 + $0x60] sm:$0xff]  ;;  %v589_v22 = vld [vmem:[#allocation2 + $0x50] sm:$0xff]  ;;  %v641_v24 = vmul.f32 0.1, %v609_v14  ;;  %v617_v28 = vmul.f32 0.9, %v585_v19 }
 0x135   : > { %1111 = vmatpush.msra.mxu2 %v677_v4  ;;  %1112 = vmatpush.msra.mxu3 %v677_v4  ;;  %v613_v16 = vld [vmem:[%s1868_s21 + $0x60] sm:$0xff]  ;;  %v629_v25 = vmul.f32 0.9, %v597_v15  ;;  %v621_v30 = vmul.f32 0.9, %v589_v22  ;;  %v610_v36 = vld [vmem:[%s1868_s21 + $0x48] sm:$0xff] }
 0x136   : > { %684 = vmatpush.msra.mxu0 %v677_v4  ;;  %1110 = vmatpush.msra.mxu1 %v677_v4  ;;  %v601_v21 = vld [vmem:[%s1868_s21] sm:$0xff]  ;;  %v645_v26 = vmul.f32 0.1, %v613_v16  ;;  %v1902_v33 = vadd.f32 %v641_v24, %v625_v20  ;;  %v598_v37 = vld [vmem:[#allocation2 + $0x70] sm:$0xff]  ;;  %v614_v38 = vld [vmem:[%s1868_s21 + $0x68] sm:$0xff] }
 0x137   : > { %1114 = vmatpush.msra.mxu2 %v676_v5  ;;  %1115 = vmatpush.msra.mxu3 %v676_v5  ;;  %v605_v23 = vld [vmem:[%s1868_s21 + $0x20] sm:$0xff]  ;;  %v633_v29 = vmul.f32 0.1, %v601_v21  ;;  %v602_v43 = vld [vmem:[%s1868_s21 + $0x8] sm:$0xff]  ;;  %v642_v46 = vmul.f32 0.1, %v610_v36 }
 0x138   : > { %685 = vmatpush.msra.mxu0 %v676_v5  ;;  %1113 = vmatpush.msra.mxu1 %v676_v5  ;;  %v637_v31 = vmul.f32 0.1, %v605_v23  ;;  %v665_v32 = vld [vmem:[#allocation9] sm:$0xff]  ;;  %v1904_v34 = vadd.f32 %v645_v26, %v629_v25  ;;  %v590_v44 = vld [vmem:[#allocation2 + $0x68] sm:$0xff]  ;;  %v630_v47 = vmul.f32 0.9, %v598_v37 }
 0x139   : > { %1117 = vmatpush.msra.mxu2 %v675_v6  ;;  %1118 = vmatpush.msra.mxu3 %v675_v6  ;;  %v594_v35 = vld [vmem:[#allocation2 + $0x20] sm:$0xff]  ;;  %v1908_v39 = vadd.f32 %v633_v29, %v617_v28  ;;  %v606_v45 = vld [vmem:[%s1868_s21 + $0x28] sm:$0xff]  ;;  %v646_v48 = vmul.f32 0.1, %v614_v38  ;;  %v634_v50 = vmul.f32 0.1, %v602_v43 }
 0x13a   : > { %686 = vmatpush.msra.mxu0 %v675_v6  ;;  %1116 = vmatpush.msra.mxu1 %v675_v6  ;;  %v1910_v40 = vadd.f32 %v637_v31, %v621_v30  ;;  %v586_v41 = vld [vmem:[#allocation2] sm:$0xff]  ;;  %v626_v42 = vmul.f32 0.9, %v594_v35  ;;  %v622_v51 = vmul.f32 0.9, %v590_v44  ;;  %v595_v55 = vld [vmem:[#allocation2 + $0x10] sm:$0xff] }
 0x13b   : > { %1120 = vmatpush.msra.mxu2 %v674_v7  ;;  %1121 = vmatpush.msra.mxu3 %v674_v7  ;;  %v618_v49 = vmul.f32 0.9, %v586_v41  ;;  %v638_v52 = vmul.f32 0.1, %v606_v45  ;;  %v1920_v54 = vadd.f32 %v646_v48, %v630_v47  ;;  %v611_v56 = vld [vmem:[%s1868_s21 + $0x50] sm:$0xff]  ;;  %v599_v57 = vld [vmem:[#allocation2 + $0x78] sm:$0xff] }
 0x13c   : > { %687 = vmatpush.msra.mxu0 %v674_v7  ;;  %1119 = vmatpush.msra.mxu1 %v674_v7  ;;  %v1918_v53 = vadd.f32 %v642_v46, %v626_v42  ;;  %v615_v58 = vld [vmem:[%s1868_s21 + $0x70] sm:$0xff]  ;;  %v587_v61 = vld [vmem:[#allocation2 + $0x58] sm:$0xff]  ;;  %v627_v62 = vmul.f32 0.9, %v595_v55  ;;  %v591_v0 = vld [vmem:[#allocation2 + $0x8] sm:$0xff] }
 0x13d   : > { %1123 = vmatpush.msra.mxu2 %v673_v8  ;;  %1124 = vmatpush.msra.mxu3 %v673_v8  ;;  %v1924_v59 = vadd.f32 %v634_v50, %v618_v49  ;;  %v1926_v60 = vadd.f32 %v638_v52, %v622_v51  ;;  %v603_v63 = vld [vmem:[%s1868_s21 + $0x10] sm:$0xff]  ;;  %v643_v2 = vmul.f32 0.1, %v611_v56  ;;  %v631_v3 = vmul.f32 0.9, %v599_v57  ;;  %v600_v13 = vld [vmem:[#allocation2 + $0x28] sm:$0xff] }
 0x13e   : > { %688 = vmatpush.msra.mxu0 %v673_v8  ;;  %1122 = vmatpush.msra.mxu1 %v673_v8  ;;  %v607_v1 = vld [vmem:[%s1868_s21 + $0x30] sm:$0xff]  ;;  %v647_v4 = vmul.f32 0.1, %v615_v58  ;;  %v619_v5 = vmul.f32 0.9, %v587_v61  ;;  %v616_v14 = vld [vmem:[%s1868_s21 + $0x78] sm:$0xff] }
 0x13f   : > { %1126 = vmatpush.msra.mxu2 %v672_v9  ;;  %1127 = vmatpush.msra.mxu3 %v672_v9  ;;  %v635_v6 = vmul.f32 0.1, %v603_v63  ;;  %v623_v7 = vmul.f32 0.9, %v591_v0  ;;  %v639_v8 = vmul.f32 0.1, %v607_v1 }
 0x140   : > { %689 = vmatpush.msra.mxu0 %v672_v9  ;;  %1125 = vmatpush.msra.mxu1 %v672_v9  ;;  %v1934_v9 = vadd.f32 %v643_v2, %v627_v62  ;;  %v604_v19 = vld [vmem:[%s1868_s21 + $0x18] sm:$0xff]  ;;  %v592_v20 = vld [vmem:[#allocation2 + $0x48] sm:$0xff]  ;;  %v632_v23 = vmul.f32 0.9, %v600_v13  ;;  %v648_v24 = vmul.f32 0.1, %v616_v14 }
 0x141   : > { %1129 = vmatpush.msra.mxu2 %v671_v10  ;;  %1130 = vmatpush.msra.mxu3 %v671_v10  ;;  %v651_v15 = vadd.f32 %v635_v6, %v619_v5  ;;  %v655_v16 = vadd.f32 %v639_v8, %v623_v7  ;;  %v608_v21 = vld [vmem:[%s1868_s21 + $0x38] sm:$0xff]  ;;  %v636_v26 = vmul.f32 0.1, %v604_v19  ;;  %v762_v35 = vmul.f32 0.5945349, %v1908_v39 }
 0x142   : > { %690 = vmatpush.msra.mxu0 %v671_v10  ;;  %1128 = vmatpush.msra.mxu1 %v671_v10  ;;  %v1936_v10 = vadd.f32 %v647_v4, %v631_v3  ;;  %v640_v28 = vmul.f32 0.1, %v608_v21  ;;  %v1946_v30 = vadd.f32 %v648_v24, %v632_v23  ;;  %v766_v36 = vmul.f32 0.5945349, %v1910_v40 }
 0x143   : > { %1132 = vmatpush.msra.mxu2 %v670_v11  ;;  %1133 = vmatpush.msra.mxu3 %v670_v11  ;;  %v770_v43 = vmul.f32 0.5945349, %v1902_v33  ;;  %v774_v44 = vmul.f32 0.5945349, %v1904_v34  ;;  %v771_v57 = vmul.f32 0.5945349, %v1918_v53 }
 0x144   : > { %691 = vmatpush.msra.mxu0 %v670_v11  ;;  %1131 = vmatpush.msra.mxu1 %v670_v11  ;;  %v596_v11 = vld [vmem:[#allocation2 + $0x38] sm:$0xff]  ;;  %v775_v58 = vmul.f32 0.5945349, %v1920_v54  ;;  %v764_v1 = vmul.f32 0.5945349, %v651_v15 }
 0x145   : > { %1135 = vmatpush.msra.mxu2 %v669_v12  ;;  %1136 = vmatpush.msra.mxu3 %v669_v12  ;;  %v768_v2 = vmul.f32 0.5945349, %v655_v16  ;;  %v772_v7 = vmul.f32 0.5945349, %v1934_v9  ;;  %v776_v8 = vmul.f32 0.5945349, %v1936_v10 }
 0x146   : > { %692 = vmatpush.msra.mxu0 %v669_v12  ;;  %1134 = vmatpush.msra.mxu1 %v669_v12  ;;  %v612_v12 = vld [vmem:[%s1868_s21 + $0x58] sm:$0xff]  ;;  %v777_v24 = vmul.f32 0.5945349, %v1946_v30 }
 0x147   : > { %1138 = vmatpush.msra.mxu2 %v668_v17  ;;  %1139 = vmatpush.msra.mxu3 %v668_v17  ;;  %v644_v22 = vmul.f32 0.1, %v612_v12 }
 0x148   : > { %693 = vmatpush.msra.mxu0 %v668_v17  ;;  %1137 = vmatpush.msra.mxu1 %v668_v17  ;;  %v588_v17 = vld [vmem:[#allocation2 + $0x18] sm:$0xff] }
 0x149   : > { %1141 = vmatpush.msra.mxu2 %v667_v18  ;;  %1142 = vmatpush.msra.mxu3 %v667_v18  ;;  %v620_v25 = vmul.f32 0.9, %v588_v17 }
 0x14a   : > { %694 = vmatpush.msra.mxu0 %v667_v18  ;;  %1140 = vmatpush.msra.mxu1 %v667_v18  ;;  %v628_v18 = vmul.f32 0.9, %v596_v11 }
 0x14b   : > { %1144 = vmatpush.msra.mxu2 %v666_v27  ;;  %1145 = vmatpush.msra.mxu3 %v666_v27  ;;  %v652_v31 = vadd.f32 %v636_v26, %v620_v25 }
 0x14c   : > { %695 = vmatpush.msra.mxu0 %v666_v27  ;;  %1143 = vmatpush.msra.mxu1 %v666_v27  ;;  %v624_v27 = vmul.f32 0.9, %v592_v20  ;;  %v1944_v29 = vadd.f32 %v644_v22, %v628_v18 }
 0x14d   : > { %1147 = vmatpush.msra.mxu2 %v665_v32  ;;  %1148 = vmatpush.msra.mxu3 %v665_v32  ;;  %v765_v17 = vmul.f32 0.5945349, %v652_v31 }
 0x14e   : > { %721 = vmatmul.f32.vlgmr.msra.gmra.mxu2 %v1902_v33  ;;  %733 = vmatmul.f32.vlgmr.msra.gmra.mxu3 %v1904_v34  ;;  %v773_v23 = vmul.f32 0.5945349, %v1944_v29 }
 0x14f   : > { %696 = vmatpush.msra.mxu0 %v665_v32  ;;  %1146 = vmatpush.msra.mxu1 %v665_v32  ;;  %v656_v32 = vadd.f32 %v640_v28, %v624_v27 }
 0x150   : > { %697 = vmatmul.f32.vlgmr.msra.gmra.mxu0 %v1908_v39  ;;  %709 = vmatmul.f32.vlgmr.msra.gmra.mxu1 %v1910_v40  ;;  %v763_v39 = vmul.f32 0.5945349, %v1924_v59  ;;  %v767_v40 = vmul.f32 0.5945349, %v1926_v60 }
 0x151   : > { %v769_v18 = vmul.f32 0.5945349, %v656_v32 }
 0x156   : > { %724 = vmatmul.f32.gmra.mxu2 %v1918_v53  ;;  %736 = vmatmul.f32.gmra.mxu3 %v1920_v54 }
 0x158   : > { %700 = vmatmul.f32.gmra.mxu0 %v1924_v59  ;;  %712 = vmatmul.f32.gmra.mxu1 %v1926_v60 }
 0x15e   : > { %727 = vmatmul.f32.gmra.mxu2 %v1934_v9  ;;  %739 = vmatmul.f32.gmra.mxu3 %v1936_v10 }
 0x160   : > { %703 = vmatmul.f32.gmra.mxu0 %v651_v15  ;;  %715 = vmatmul.f32.gmra.mxu1 %v655_v16 }
 0x166   : > { %730 = vmatmul.f32.gmra.mxu2 %v1944_v29  ;;  %742 = vmatmul.f32.gmra.mxu3 %v1946_v30 }
 0x168   : > { %706 = vmatmul.f32.gmra.mxu0 %v652_v31  ;;  %718 = vmatmul.f32.gmra.mxu1 %v656_v32 }
 0x1cd   : > { %v698_v37 = vpop.f32.mrf.mxu0  ;;  %v710_v38 = vpop.f32.mrf.mxu1 }
 0x1ce   : > { %v746_v41 = vmul.f32 0.4054651, %v698_v37  ;;  %v750_v42 = vmul.f32 0.4054651, %v710_v38 }
 0x1d0   : > { %v778_v45 = vadd.f32 %v762_v35, %v746_v41  ;;  %v782_v46 = vadd.f32 %v766_v36, %v750_v42 }
 0x1d1   : > { %v722_v47 = vpop.f32.mrf.mxu2  ;;  %v734_v48 = vpop.f32.mrf.mxu3 }
 0x1d2   : > { %794 = vst [vmem:[%s1878_s4] sm:$0xff] %v778_v45  ;;  %v754_v49 = vmul.f32 0.4054651, %v722_v47  ;;  %v758_v50 = vmul.f32 0.4054651, %v734_v48 }
 0x1d3   : > { %798 = vst [vmem:[%s1878_s4 + $0x20] sm:$0xff] %v782_v46 }
 0x1d4   : > { %v786_v51 = vadd.f32 %v770_v43, %v754_v49  ;;  %v790_v52 = vadd.f32 %v774_v44, %v758_v50 }
 0x1d5   : > { %v701_v33 = vpop.f32.mrf.mxu0  ;;  %v713_v55 = vpop.f32.mrf.mxu1 }
 0x1d6   : > { %802 = vst [vmem:[%s1878_s4 + $0x40] sm:$0xff] %v786_v51  ;;  %v747_v34 = vmul.f32 0.4054651, %v701_v33  ;;  %v751_v56 = vmul.f32 0.4054651, %v713_v55 }
 0x1d7   : > { %806 = vst [vmem:[%s1878_s4 + $0x60] sm:$0xff] %v790_v52 }
 0x1d8   : > { %v779_v61 = vadd.f32 %v763_v39, %v747_v34  ;;  %v783_v62 = vadd.f32 %v767_v40, %v751_v56 }
 0x1d9   : > { %v725_v59 = vpop.f32.mrf.mxu2  ;;  %v737_v63 = vpop.f32.mrf.mxu3 }
 0x1da   : > { %795 = vst [vmem:[%s1878_s4 + $0x8] sm:$0xff] %v779_v61  ;;  %v755_v60 = vmul.f32 0.4054651, %v725_v59  ;;  %v759_v0 = vmul.f32 0.4054651, %v737_v63 }
 0x1db   : > { %799 = vst [vmem:[%s1878_s4 + $0x28] sm:$0xff] %v783_v62 }
 0x1dc   : > { %v787_v3 = vadd.f32 %v771_v57, %v755_v60  ;;  %v791_v4 = vadd.f32 %v775_v58, %v759_v0 }
 0x1dd   : > { %v704_v5 = vpop.f32.mrf.mxu0  ;;  %v716_v53 = vpop.f32.mrf.mxu1 }
 0x1de   : > { %803 = vst [vmem:[%s1878_s4 + $0x48] sm:$0xff] %v787_v3  ;;  %v748_v6 = vmul.f32 0.4054651, %v704_v5  ;;  %v752_v54 = vmul.f32 0.4054651, %v716_v53 }
 0x1df   : > { %807 = vst [vmem:[%s1878_s4 + $0x68] sm:$0xff] %v791_v4 }
 0x1e0   : > { %v780_v11 = vadd.f32 %v764_v1, %v748_v6  ;;  %v784_v12 = vadd.f32 %v768_v2, %v752_v54 }
 0x1e1   : > { %v728_v13 = vpop.f32.mrf.mxu2  ;;  %v740_v14 = vpop.f32.mrf.mxu3 }
 0x1e2   : > { %796 = vst [vmem:[%s1878_s4 + $0x10] sm:$0xff] %v780_v11  ;;  %v756_v15 = vmul.f32 0.4054651, %v728_v13  ;;  %v760_v16 = vmul.f32 0.4054651, %v740_v14 }
 0x1e3   : > { %800 = vst [vmem:[%s1878_s4 + $0x30] sm:$0xff] %v784_v12 }
 0x1e4   : > { %v788_v19 = vadd.f32 %v772_v7, %v756_v15  ;;  %v792_v20 = vadd.f32 %v776_v8, %v760_v16 }
 0x1e5   : > { %v707_v21 = vpop.f32.mrf.mxu0  ;;  %v719_v9 = vpop.f32.mrf.mxu1 }
 0x1e6   : > { %804 = vst [vmem:[%s1878_s4 + $0x50] sm:$0xff] %v788_v19  ;;  %v749_v10 = vmul.f32 0.4054651, %v707_v21  ;;  %v753_v22 = vmul.f32 0.4054651, %v719_v9 }
 0x1e7   : > { %808 = vst [vmem:[%s1878_s4 + $0x70] sm:$0xff] %v792_v20 }
 0x1e8   : > { %v781_v25 = vadd.f32 %v765_v17, %v749_v10  ;;  %v785_v26 = vadd.f32 %v769_v18, %v753_v22 }
 0x1e9   : > { %v731_v27 = vpop.f32.mrf.mxu2  ;;  %v743_v28 = vpop.f32.mrf.mxu3 }
 0x1ea   : > { %797 = vst [vmem:[%s1878_s4 + $0x18] sm:$0xff] %v781_v25  ;;  %v757_v31 = vmul.f32 0.4054651, %v731_v27  ;;  %v761_v32 = vmul.f32 0.4054651, %v743_v28 }
 0x1eb   : > { %801 = vst [vmem:[%s1878_s4 + $0x38] sm:$0xff] %v785_v26 }
 0x1ec   : > { %v789_v35 = vadd.f32 %v773_v23, %v757_v31  ;;  %v793_v36 = vadd.f32 %v777_v24, %v761_v32 }
 0x1ee   : > { %805 = vst [vmem:[%s1878_s4 + $0x58] sm:$0xff] %v789_v35 }
 0x1ef   : > { %809 = vst [vmem:[%s1878_s4 + $0x78] sm:$0xff] %v793_v36 }
 0x1f0 PF: > { %s2090_s24 = sld [smem:[#allocation19_spill]]  ;;  %s823_s3 = sshll.u32 %s1878_s4, 4  ;;  %s824_s3 = int_to_ptr.vmem [resolvable:$true] %s823_s3 }
 0x1f1   : > { %s2091_s5 = sld [smem:[#allocation27_spill]]  ;;  %s811_s25 = scalar_lea.sflag [#allocation5], %s289_s6 }
 0x1f6   : > { %s1076_s29 = sshll.u32 %s2090_s24, 7 }
 0x1f7   : > { %s822_s23 = scalar_lea.hbm %s2091_s5, %s1076_s29  ;;  %s1443_s8 = scalar_lea.hbm %s2091_s5, 256 }
 0x1f8   : > { %s825_s30 = sshll.u32 %s822_s23, 4  ;;  %s826_s30 = int_to_ptr.hbm [resolvable:$true] %s825_s30 }
 0x1f9   : > { %s1437_s9 = sshra.s32 %s826_s30, 4  ;;  %s1438_s9 = int_to_ptr.hbm [resolvable:$true] %s1437_s9 }
 0x1fa   : > { %s1439_s20 = scalar_lea.hbm %s1438_s9, 128  ;;  %p1444_p0 = scmp.lt.s32.totalorder %s1438_s9, %s2091_s5 }
 0x1fb   : > { %p1440_p13 = scmp.ne.s32.totalorder %s1438_s9, %s1439_s20  ;;  %p1445_p4 = scmp.lt.s32.totalorder %s1443_s8, %s1439_s20 }
 0x1fd   : > { %p1441_p2 = pnand %p1440_p13, %p1821_p10  ;;  %p1446_p5 = por %p1445_p4, %p1444_p0 }
 0x1ff   : > { %p1442_p3 = pneg %p1441_p2 }
 0x201   : > { %p1447_p6 = pnand %p1446_p5, %p1442_p3 }
 0x203   : > { %1450 = shalt.err (!%p1447_p6)
}
 0x204   : > { %s1589_s6 = smov 128   ;;  %s1590_s21 = smov 8  }
 0x205   : > { %1159 = dma.vmem_to_hbm [thread:$0]  (%p1821_p10), %s824_s3, 2048, %s826_s30, %s811_s25, %s1589_s6, %s1589_s6, %s1590_s21  }
 0x206 PF: > { %p1182_p11 = scmp.ge.s32.totalorder %s1581_s28, 2  ;;  %s840_s4 = sand.u32 1, %s1529_s15  }
 0x207   : > { %s841_s24 = scalar_lea.sflag [#allocation5], %s840_s4 }
 0x208   : > { %p1176_p9 = pnand %p1182_p11, %p1832_p8 }
 0x20a   : > { %p1177_p1 = pneg %p1176_p9 }
 0x20c   : > { %1524 = dma.done.wait (%p1177_p1), %s841_s24, 2048  }
 0x20d   : > { %1526 = vsyncadd (%p1177_p1), %s841_s24, 4294965248  ;;  %s24_s28 = sadd.s32 1, %s1581_s28   ;;  %s2093_s14 = sld [smem:[#allocation17_spill]] }
 0x20e   : > { %p2000_p7 = scmp.ge.s32.totalorder %s24_s28, 6   ;;  %s2094_s20 = sld [smem:[#allocation23_spill]] }
 0x20f   : > { %s2095_s1 = sld [smem:[#allocation18_spill]]  ;;  %s2100_s15 = smov %s1533_s16 }
 0x210   : > { %s2096_s23 = sld [smem:[#allocation24_spill]]  ;;  %s2101_s16 = smov %s1537_s17 }
 0x211   : > { %s2097_s24 = sld [smem:[#allocation20_spill]]  ;;  %s2102_s17 = smov %s1809_s11 }
 0x212   : > { %s2098_s26 = sld [smem:[#allocation21_spill]]  ;;  %s2103_s18 = smov %s1545_s19 }
 0x213   : > { %s2099_s13 = sld [smem:[#allocation22_spill]]  ;;  %s2104_s19 = smov %s2093_s14 }
 0x214   : > { %s2105_s21 = smov %s1557_s22  ;;  %s2107_s25 = smov %s1577_s27 }
 0x215   : > { %s2106_s22 = smov %s2095_s1  ;;  %23 = sbr.rel (!%p2000_p7) target bundleno = 17 (0x11), region = 117 }
 0x219   : > { %s2108_s27 = smov %s2099_s13 }
 0x21a   :  { %847 = vsyncpa [#allocation4], 1 }
 0x21b   :  { %849 = vsyncpa [#allocation4 + $0x1], 1 }
 0x21c   :  { %850 = vsyncpa [#allocation7], 1 }
 0x21d   :  { %852 = vsyncpa [#allocation7 + $0x1], 1 }
 0x21e   :  { %853 = vsyncpa [#allocation10], 1 }
 0x21f   :  { %854 = vsyncpa [#allocation5], 1 }
 0x220   :  { %856 = vsyncpa [#allocation5 + $0x1], 1 }

</bundles_post_ra>
